<compile_context>
chip_gen: v7x
topology: tpu7x:2x2x1
jax: 0.10.0
libtpu: 0.0.40
codegen_flags: <defaults>
</compile_context>

<pallas_src>
import functools

import jax
import jax.numpy as jnp
from jax.experimental import pallas as pl
from jax.experimental.pallas import tpu as pltpu


# --------------------------------------------------------------------------- #
# Kernel 1: fused QKV projection  (x @ W_qkv), full MXU width, W resident.
# --------------------------------------------------------------------------- #
def qkv_proj_kernel(x_ref, w_ref, o_ref):
    o_ref[...] = jnp.dot(x_ref[...], w_ref[...],
                         preferred_element_type=jnp.float32).astype(o_ref.dtype)


# --------------------------------------------------------------------------- #
# Kernel 2: flash attention over pre-projected Q/K/V + fused output projection.
# Grid = (batch, q_tile, head_block, kv_tile); head_block & kv are reductions.
# --------------------------------------------------------------------------- #
def flash_attn_kernel(q_ref, k_ref, v_ref, wo_ref, bo_ref, o_ref,
                      m_scr, l_scr, acc_scr, o_scr, *, head_block):
    hb = pl.program_id(2)
    ki = pl.program_id(3)
    nhb = pl.num_programs(2)
    nk = pl.num_programs(3)

    # ---- init output accumulator once per (batch, q_tile) -------------------
    @pl.when(jnp.logical_and(hb == 0, ki == 0))
    def _():
        o_scr[...] = jnp.zeros_like(o_scr)

    # ---- per-head-block softmax state reset at first kv step ----------------
    @pl.when(ki == 0)
    def _():
        m_scr[...] = jnp.full_like(m_scr, -jnp.inf)
        l_scr[...] = jnp.zeros_like(l_scr)
        acc_scr[...] = jnp.zeros_like(acc_scr)

    # ---- online-softmax update, one head at a time (bounded vreg pressure) --
    for h in range(head_block):                      # static unroll (HB small)
        q = q_ref[h]                                 # (tq, d) bf16 (pre-scaled)
        k = k_ref[h]                                 # (tk, d) bf16
        v = v_ref[h]                                 # (tk, d) bf16

        s = jax.lax.dot_general(q, k, (((1,), (1,)), ((), ())),
                                preferred_element_type=jnp.float32)  # (tq, tk)

        m_prev = m_scr[h]
        m_new = jnp.maximum(m_prev, jnp.max(s, axis=-1, keepdims=True))
        alpha = jnp.exp(m_prev - m_new)
        p = jnp.exp(s - m_new)

        l_scr[h] = alpha * l_scr[h] + jnp.sum(p, axis=-1, keepdims=True)
        acc_scr[h] = alpha * acc_scr[h] + jnp.dot(
            p.astype(v.dtype), v, preferred_element_type=jnp.float32)
        m_scr[h] = m_new

    # ---- per-head-block finalize: normalize + wide W_out fold ---------------
    @pl.when(ki == nk - 1)
    def _():
        outs = []
        for h in range(head_block):
            inv_l = pl.reciprocal(l_scr[h], approx=True)
            outs.append((acc_scr[h] * inv_l).astype(wo_ref.dtype))   # (tq, d)
        out_cat = jnp.concatenate(outs, axis=-1)                     # (tq, HB*d)
        o_scr[...] += jnp.dot(out_cat, wo_ref[...],
                              preferred_element_type=jnp.float32)    # (tq, dim)

    # ---- final write: add bias, store ----------------------------------------
    @pl.when(jnp.logical_and(hb == nhb - 1, ki == nk - 1))
    def _():
        o_ref[...] = (o_scr[...] + bo_ref[...].astype(jnp.float32)
                      ).astype(o_ref.dtype)


def _pick_tile(n, preferred):
    for t in preferred:
        if n % t == 0 and n >= t:
            return t
    return n  # full dim is always a legal block size


def attention_forward(x, w_qkv, w_out, b_out, *, heads, dim_head,
                      head_block=None, compute_dtype=jnp.bfloat16):
    """x: (b, n, dim).  w_qkv: (dim, 3*heads*dim_head) (x @ W layout),
    w_out: (heads*dim_head, dim), b_out: (1, dim).  Returns (b, n, dim)."""
    b, n, dim = x.shape
    inner = heads * dim_head
    scale = dim_head ** -0.5

    if head_block is None:
        head_block = next(hbc for hbc in (4, 3, 2, 1) if heads % hbc == 0)
    assert heads % head_block == 0
    n_head_blocks = heads // head_block

    # ---- boundary-side layout / dtype plumbing (no in-kernel relayout) -------
    # Fold `scale` into W_q columns; cast everything the MXU touches to bf16.
    w_qkv_s = w_qkv.at[:, :inner].multiply(scale)
    x_c = x.astype(compute_dtype)
    w_qkv_c = w_qkv_s.astype(compute_dtype)
    w_out_c = w_out.astype(compute_dtype)          # (inner, dim), rows h-major
    b_o = b_out.reshape(1, dim).astype(jnp.float32)

    # ---- Kernel 1: fused QKV projection (full-width GEMM, W resident) --------
    tn = _pick_tile(n, (128,))
    qkv = pl.pallas_call(
        qkv_proj_kernel,
        out_shape=jax.ShapeDtypeStruct((b, n, 3 * inner), compute_dtype),
        grid_spec=pltpu.PrefetchScalarGridSpec(
            num_scalar_prefetch=0,
            grid=(b, n // tn),
            in_specs=[
                pl.BlockSpec((None, tn, dim), lambda bi, ni: (bi, ni, 0)),
                # constant index map -> W_qkv fetched once, stays resident
                pl.BlockSpec((dim, 3 * inner), lambda bi, ni: (0, 0)),
            ],
            out_specs=pl.BlockSpec((None, tn, 3 * inner),
                                   lambda bi, ni: (bi, ni, 0)),
        ),
        compiler_params=pltpu.CompilerParams(
            dimension_semantics=("parallel", "parallel")),
    )(x_c, w_qkv_c)

    # Wrapper-side reshape to head-major (layout plumbing only; stays bf16).
    qkv = qkv.reshape(b, n, 3, heads, dim_head)
    qkv = jnp.transpose(qkv, (2, 0, 3, 1, 4))      # (3, b, heads, n, d)
    q, k, v = qkv[0], qkv[1], qkv[2]

    # ---- Kernel 2: flash attention + fused output projection -----------------
    tq = _pick_tile(n, (128,))
    tk = _pick_tile(n, (256, 128))
    grid = (b, n // tq, n_head_blocks, n // tk)

    kernel = functools.partial(flash_attn_kernel, head_block=head_block)

    return pl.pallas_call(
        kernel,
        out_shape=jax.ShapeDtypeStruct((b, n, dim), x.dtype),
        grid_spec=pltpu.PrefetchScalarGridSpec(
            num_scalar_prefetch=0,
            grid=grid,
            in_specs=[
                # pre-projected Q / K / V, head-major, bf16
                pl.BlockSpec((None, head_block, tq, dim_head),
                             lambda bi, qi, hb, ki: (bi, hb, qi, 0)),
                pl.BlockSpec((None, head_block, tk, dim_head),
                             lambda bi, qi, hb, ki: (bi, hb, ki, 0)),
                pl.BlockSpec((None, head_block, tk, dim_head),
                             lambda bi, qi, hb, ki: (bi, hb, ki, 0)),
                # W_out rows for this head block (re-DMA'd only on hb change)
                pl.BlockSpec((head_block * dim_head, dim),
                             lambda bi, qi, hb, ki: (hb, 0)),
                # output bias (tiny, invariant -> resident)
                pl.BlockSpec((1, dim), lambda bi, qi, hb, ki: (0, 0)),
            ],
            out_specs=pl.BlockSpec((None, tq, dim),
                                   lambda bi, qi, hb, ki: (bi, qi, 0)),
            scratch_shapes=[
                pltpu.VMEM((head_block, tq, 1), jnp.float32),         # m
                pltpu.VMEM((head_block, tq, 1), jnp.float32),         # l
                pltpu.VMEM((head_block, tq, dim_head), jnp.float32),  # attn@v
                pltpu.VMEM((tq, dim), jnp.float32),                   # out acc
            ],
        ),
        compiler_params=pltpu.CompilerParams(
            dimension_semantics=("parallel", "parallel",
                                 "arbitrary", "arbitrary")),
    )(q, k, v, w_out_c, b_o)


def reference_attention(x, w_qkv, w_out, b_out, *, heads, dim_head):
    """Pure-JAX fp32 reference mirroring the PyTorch forward (mask=None)."""
    b, n, dim = x.shape
    inner = heads * dim_head
    scale = dim_head ** -0.5
    qkv = x @ w_qkv
    q, k, v = jnp.split(qkv, 3, axis=-1)

    def sh(t):
        return t.reshape(b, n, heads, dim_head).transpose(0, 2, 1, 3)

    q, k, v = sh(q), sh(k), sh(v)
    dots = jnp.einsum('bhid,bhjd->bhij', q, k) * scale
    attn = jax.nn.softmax(dots, axis=-1)
    out = jnp.einsum('bhij,bhjd->bhid', attn, v)
    out = out.transpose(0, 2, 1, 3).reshape(b, n, inner)
    return out @ w_out + b_out


if __name__ == "__main__":
    # Small shapes that still exercise q-tiling (4 tiles), kv-tiling (2 tiles),
    # head blocking (2 head blocks) and the lane-dense (dim=128) output path.
    B, N, DIM = 2, 512, 128
    HEADS, DIM_HEAD = 4, 32
    INNER = HEADS * DIM_HEAD

    key = jax.random.PRNGKey(0)
    kx, kqkv, kwo, kbo = jax.random.split(key, 4)

    x = jax.random.normal(kx, (B, N, DIM), dtype=jnp.float32)
    # to_qkv: Linear(dim, 3*inner, bias=False); to_out: Linear(inner, dim)+bias.
    # Stored already transposed so the math is x @ W.
    w_qkv = jax.random.normal(kqkv, (DIM, 3 * INNER), dtype=jnp.float32) * 0.1
    w_out = jax.random.normal(kwo, (INNER, DIM), dtype=jnp.float32) * 0.1
    b_out = jax.random.normal(kbo, (1, DIM), dtype=jnp.float32) * 0.1

    out = attention_forward(x, w_qkv, w_out, b_out,
                            heads=HEADS, dim_head=DIM_HEAD,
                            head_block=2, compute_dtype=jnp.bfloat16)
    out = jax.block_until_ready(out)

    ref = reference_attention(x, w_qkv, w_out, b_out,
                              heads=HEADS, dim_head=DIM_HEAD)
    assert out.shape == (B, N, DIM)
    # bf16 MXU operands with fp32 accumulation -> looser tolerance vs fp32 ref.
    assert jnp.allclose(out, ref, atol=2e-2, rtol=2e-2), "mismatch vs reference"

    print("KERNEL_OK")
</pallas_src>

<mosaic_0001>
module attributes {stable_mosaic.version = 11 : i64} {
  func.func @qkv_proj_kernel(%arg0: i32, %arg1: i32, %arg2: memref<1x128x128xbf16, #tpu.memory_space<vmem>>, %arg3: memref<128x384xbf16, #tpu.memory_space<vmem>>, %arg4: memref<1x128x384xbf16, #tpu.memory_space<vmem>>) attributes {dimension_semantics = [#tpu.dimension_semantics<parallel>, #tpu.dimension_semantics<parallel>], iteration_bounds = array<i64: 2, 4>, scalar_prefetch = 0 : i64, scratch_operands = 0 : i64, tpu.core_type = #tpu.core_type<tc>, window_params = [{transform_indices = @transform_0, window_bounds = array<i64: 1, 128, 128>}, {pipeline_mode = #tpu.pipeline_mode<synchronous>, transform_indices = @transform_1, window_bounds = array<i64: 128, 384>}, {transform_indices = @transform_2, window_bounds = array<i64: 1, 128, 384>}]} {
    %c0 = arith.constant 0 : index
    %c0_0 = arith.constant 0 : index
    %c0_1 = arith.constant 0 : index
    %0 = vector.load %arg2[%c0, %c0_0, %c0_1] : memref<1x128x128xbf16, #tpu.memory_space<vmem>>, vector<1x128x128xbf16>
    %1 = vector.shape_cast %0 : vector<1x128x128xbf16> to vector<128x128xbf16>
    %c0_2 = arith.constant 0 : index
    %c0_3 = arith.constant 0 : index
    %2 = vector.load %arg3[%c0_2, %c0_3] : memref<128x384xbf16, #tpu.memory_space<vmem>>, vector<128x384xbf16>
    %cst = arith.constant dense<0.000000e+00> : vector<128x384xf32>
    %3 = tpu.matmul %1, %2, %cst {dimension_numbers = #tpu.dot_dimension_numbers<[1], [0], [0], [1], [0, 0, 1, 1], [], []>} : vector<128x128xbf16>, vector<128x384xbf16>, vector<128x384xf32> -> vector<128x384xf32>
    %4 = arith.truncf %3 : vector<128x384xf32> to vector<128x384xbf16>
    %c0_4 = arith.constant 0 : index
    %c0_5 = arith.constant 0 : index
    %c0_6 = arith.constant 0 : index
    %5 = vector.load %arg4[%c0_4, %c0_5, %c0_6] : memref<1x128x384xbf16, #tpu.memory_space<vmem>>, vector<1x128x384xbf16>
    %6 = vector.shape_cast %5 : vector<1x128x384xbf16> to vector<128x384xbf16>
    %7 = vector.shape_cast %4 : vector<128x384xbf16> to vector<1x128x384xbf16>
    tpu.vector_store %arg4[%c0_4, %c0_5, %c0_6], %7 {strides = array<i32>} : memref<1x128x384xbf16, #tpu.memory_space<vmem>>, vector<1x128x384xbf16>,
    return
  }
  func.func @transform_0(%arg0: i32, %arg1: i32) -> (i32, i32, i32) {
    %c0_i32 = arith.constant 0 : i32
    %c0_i32_0 = arith.constant 0 : i32
    return %arg0, %arg1, %c0_i32 : i32, i32, i32
  }
  func.func @transform_1(%arg0: i32, %arg1: i32) -> (i32, i32) {
    %c0_i32 = arith.constant 0 : i32
    %c0_i32_0 = arith.constant 0 : i32
    %c0_i32_1 = arith.constant 0 : i32
    return %c0_i32, %c0_i32_0 : i32, i32
  }
  func.func @transform_2(%arg0: i32, %arg1: i32) -> (i32, i32, i32) {
    %c0_i32 = arith.constant 0 : i32
    %c0_i32_0 = arith.constant 0 : i32
    return %arg0, %arg1, %c0_i32 : i32, i32, i32
  }
}

</mosaic_0001>

<bundles_post_ra>
// kernel: tpu_custom_call.1
= control target key start
LH: loop header
LB: loop body
LE: loop exit
PB: predicated region body
PF: predicated region fallthrough
CT: control target
= control target key end

     0   :  { %s1725_s0 = inlined_call_operand.hbm [shape: bf16[2,512,128], index: 0, kind: input, shape index: {}]   ;;  %s1726_s1 = inlined_call_operand.hbm [shape: bf16[128,384], index: 1, kind: input, shape index: {}]   ;;  %s1727_s2 = inlined_call_operand.hbm [shape: bf16[2,512,384], index: 2, kind: output, shape index: {}]  }
   0x1   :  { %1735 = sst [smem:[#allocation14_spill]] %s1726_s1 }
   0x2   :  { %7 = vsyncpa [#allocation3], 0 }
   0x3   :  { %9 = vsyncpa [#allocation3 + $0x1], 0 }
   0x4   :  { %10 = vsyncpa [#allocation6], 0 }
   0x5   :  { %11 = vsyncpa [#allocation4], 0 }
   0x6   :  { %13 = vsyncpa [#allocation4 + $0x1], 0  ;;  %s1428_s9 = smov 0   ;;  %s1430_s10 = smov 0  }
   0x7   :  { %s1432_s11 = smov 0   ;;  %s1434_s12 = smov 0  }
   0x8   :  { %s1436_s13 = smov 0   ;;  %s1438_s14 = smov 0  }
   0x9   :  { %s1440_s15 = smov 0   ;;  %s1442_s16 = smov 0  }
   0xa LB: > { %1736 = sst [smem:[#allocation11_spill]] %s1393_s14  ;;  %s941_s17 = sadd.s32 4294967295, %s1401_s16   ;;  %s1401_s16 = sphi %s1442_s16, %s19_s16   ;;  %s1397_s15 = sphi %s1440_s15, %s1761_s15   ;;  %s1393_s14 = sphi %s1438_s14, %s1755_s14   ;;  %s1389_s13 = sphi %s1436_s13, %s1760_s13   ;;  %s1385_s12 = sphi %s1434_s12, %s1754_s12   ;;  %s1381_s11 = sphi %s1432_s11, %s1759_s11   ;;  %s1377_s10 = sphi %s1430_s10, %s1758_s10   ;;  %s1373_s9 = sphi %s1428_s9, %s1757_s9  }
   0xb   : > { %s942_s18 = sadd.s32 4294967294, %s1401_s16   ;;  %p53_p0 = scmp.ne.s32.totalorder %s1377_s10, %s1373_s9 }
   0xc   : > { %p1472_p1 = scmp.eq.s32.totalorder %s941_s17, 0  ;;  %p1476_p2 = scmp.eq.s32.totalorder %s941_s17, 7 }
   0xd   : > { %p106_p3 = scmp.eq.s32.totalorder %s942_s18, 7  ;;  %p943_p5 = scmp.ge.s32.totalorder %s1401_s16, 1 }
   0xe   : > { %s1737_s19 = scalar_select %p1472_p1, 1, 0 }
   0xf   : > { %s1738_s20 = scalar_select %p1476_p2, 1, 0 }
  0x10   : > { %p1482_p4 = por %p1472_p1, %p53_p0  ;;  %p1487_p6 = por %p106_p3, %p53_p0 }
  0x11   : > { %p113_p7 = scmp.lt.s32.totalorder %s1401_s16, 9  ;;  %s1403_s24 = smov [#allocation5]  }
  0x12   : > { %s1739_s21 = scalar_select %p1482_p4, 1, 0 }
  0x13   : > { %s1740_s22 = scalar_select %p1487_p6, 1, 0 }
  0x14   : > { %p1492_p8 = pnand %p943_p5, %p113_p7  ;;  %s125_s25 = sshll.u32 %s1403_s24, 4  ;;  %s126_s25 = int_to_ptr.vmem [resolvable:$true] %s125_s25 }
  0x15   : > { %s1743_s1 = sld [smem:[#allocation14_spill]] }
  0x16   : > { %s1741_s23 = scalar_select %p1492_p8, 1, 0 }
  0x17   : > { %p1113_p9 = pneg %p1492_p8 }
  0x19   : > { %p1500_p10 = pnand %p1113_p9, %p1472_p1 }
  0x1b   : > { %s1241_s29 = scalar_lea.hbm %s1743_s1, 3072  ;;  %p1243_p12 = pneg %p1500_p10 }
  0x1c   : > { %p1242_p11 = scmp.ne.s32.totalorder %s1743_s1, %s1241_s29  ;;  %p1248_p3 = scmp.lt.u32.totalorder %s1241_s29, %s1743_s1 }
  0x1e   : > { %p1244_p13 = pnand %p1243_p12, %p1242_p11 }
  0x20   : > { %p1245_p0 = pneg %p1244_p13 }
  0x22   : > { %p1250_p5 = pnand %p1248_p3, %p1245_p0 }
  0x24   : > { %1253 = shalt.err (!%p1250_p5)
}
  0x25   : > { %s1254_s6 = scalar_lea.vmem %s126_s25, 3072  ;;  %p1262_p1 = scmp.lt.s32.totalorder %s126_s25, %s126_s25 }
  0x26   : > { %p1255_p7 = scmp.ne.s32.totalorder %s126_s25, %s1254_s6  ;;  %p1263_p4 = scmp.lt.s32.totalorder %s1254_s6, %s1254_s6 }
  0x28   : > { %p1257_p9 = pnand %p1255_p7, %p1243_p12  ;;  %p1264_p8 = por %p1263_p4, %p1262_p1 }
  0x2a   : > { %p1258_p6 = pneg %p1257_p9 }
  0x2c   : > { %p1265_p2 = pnand %p1264_p8, %p1258_p6 }
  0x2e   : > { %1268 = shalt.err (!%p1265_p2)
}
  0x2f   : > { %s1404_s7 = smov 192   ;;  %s1405_s8 = smov 12  }
  0x30   : > { %1116 = dma.hbm_to_vmem [thread:$0]  (!%p1500_p10), %s1743_s1, 3072, %s126_s25, [#allocation6], %s1404_s7, %s1404_s7, %s1405_s8  }
  0x31   : > { %s28_s24 = sadd.s32 1, %s1393_s14  ;;  %s31_s27 = sadd.s32 1, %s1397_s15 }
  0x32   : > { %p29_p1 = scmp.ge.s32.totalorder %s28_s24, 4  ;;  %s40_s28 = sadd.s32 1, %s1381_s11 }
  0x33   : > { %p47_p2 = scmp.ne.s32.totalorder %s1381_s11, %s1377_s10  ;;  %p48_p4 = scmp.eq.s32.totalorder %s1401_s16, 0 }
  0x34   : > { %s1763_s24 = smov (%p29_p1, %s28_s24), 0  ;;  %s1765_s27 = smov (!%p29_p1, %s31_s27), %s1397_s15 }
  0x35   : > { %1744 = sst [smem:[#allocation12_spill]] %s1763_s24  ;;  %s36_s29 = ssub.s32 %s1393_s14, %s1763_s24 }
  0x36   : > { %p33_p6 = scmp.ge.s32.totalorder %s1765_s27, 2  ;;  %p1745_p8 = scmp.ne.s32.totalorder %s1738_s20, 0 }
  0x37   : > { %p1537_p10 = por %p48_p4, %p47_p2  ;;  %p1126_p12 = scmp.lt.s32.totalorder %s1401_s16, 8 }
  0x38   : > { %p1533_p11 = por %p1745_p8, %p47_p2  ;;  %s1767_s27 = smov (%p33_p6, %s1765_s27), 0 }
  0x39   : > { %1748 = sst [smem:[#allocation13_spill]] %s1767_s27  ;;  %s139_s30 = sand.u32 1, %s1381_s11  }
  0x3a   : > { %s947_s3 = sshll.u32 %s1393_s14, 4  ;;  %s35_s4 = ssub.s32 %s1397_s15, %s1767_s27 }
  0x3b   : > { %s37_s5 = sor.u32 %s36_s29, %s35_s4  ;;  %s946_s6 = sshll.u32 %s139_s30, 6 }
  0x3c   : > { %p38_p13 = scmp.eq.s32.totalorder %s37_s5, 0  ;;  %s948_s20 = sshll.u32 %s1397_s15, 6 }
  0x3d   : > { %s143_s7 = scalar_lea.vmem [#allocation2], %s946_s6  ;;  %s149_s18 = sadd.s32 %s948_s20, %s947_s3 }
  0x3e   : > { %s152_s8 = sshll.u32 %s143_s7, 4  ;;  %s949_s1 = sshll.u32 %s149_s18, 6  ;;  %s1552_s8 = int_to_ptr.vmem [resolvable:$true] %s152_s8 }
  0x3f   : > { %s1550_s17 = scalar_select %p38_p13, %s1381_s11, %s40_s28  }
  0x40   : > { %p1558_p0 = pnand %p1126_p12, %p1537_p10  ;;  %s1565_s29 = scalar_lea.hbm %s1725_s0, %s949_s1 }
  0x41   : > { %s1567_s28 = scalar_lea.sflag [#allocation3], %s139_s30  ;;  %s1269_s3 = scalar_lea.hbm %s1565_s29, 1024 }
  0x42   : > { %p1270_p3 = scmp.ne.s32.totalorder %s1565_s29, %s1269_s3  ;;  %p1271_p5 = pneg %p1558_p0 }
  0x43   : > { %s1274_s27 = scalar_lea.hbm %s1725_s0, 8192  ;;  %p1275_p1 = scmp.lt.u32.totalorder %s1565_s29, %s1725_s0 }
  0x44   : > { %p1272_p7 = pnand %p1271_p5, %p1270_p3  ;;  %p1276_p2 = scmp.lt.u32.totalorder %s1274_s27, %s1269_s3 }
  0x45   : > { %p1278_p6 = scmp.lt.u32.totalorder %s1269_s3, %s1565_s29 }
  0x46   : > { %p1273_p9 = pneg %p1272_p7  ;;  %p1277_p4 = por %p1276_p2, %p1275_p1 }
  0x48   : > { %p1279_p8 = por %p1278_p6, %p1277_p4 }
  0x4a   : > { %p1280_p10 = pnand %p1279_p8, %p1273_p9 }
  0x4c   : > { %1283 = shalt.err (!%p1280_p10)
}
  0x4d   : > { %s1284_s30 = scalar_lea.vmem %s1552_s8, 1024  ;;  %s1406_s5 = smov [#allocation2]  }
  0x4e   : > { %p1285_p12 = scmp.ne.s32.totalorder %s1552_s8, %s1284_s30  ;;  %s1289_s6 = sshll.u32 %s1406_s5, 4  ;;  %s1290_s6 = int_to_ptr.vmem [resolvable:$false] %s1289_s6 }
  0x4f   : > { %s1291_s20 = scalar_lea.vmem %s1290_s6, 2048  ;;  %p1292_p7 = scmp.lt.s32.totalorder %s1552_s8, %s1290_s6 }
  0x50   : > { %p1287_p13 = pnand %p1285_p12, %p1271_p5  ;;  %p1293_p1 = scmp.lt.s32.totalorder %s1291_s20, %s1284_s30 }
  0x52   : > { %p1288_p3 = pneg %p1287_p13  ;;  %p1294_p2 = por %p1293_p1, %p1292_p7 }
  0x54   : > { %p1295_p4 = pnand %p1294_p2, %p1288_p3 }
  0x56   : > { %1298 = shalt.err (!%p1295_p4)
}
  0x57   : > { %s1407_s7 = smov 64   ;;  %s1408_s18 = smov 4  }
  0x58   : > { %1120 = dma.hbm_to_vmem [thread:$0]  (!%p1558_p0), %s1565_s29, 1024, %s1552_s8, %s1567_s28, %s1407_s7, %s1407_s7, %s1408_s18  }
  0x59   : > { %p1750_p5 = scmp.ne.s32.totalorder %s1741_s23, 0 }
  0x5a   : > { %s1598_s3 = sand.u32 (!%p1750_p5), 1, %s1377_s10   ;;  %p1751_p9 = scmp.ne.s32.totalorder (!%p1750_p5), %s1739_s21, 0 }
  0x5b   : > { %164 = sbr.rel (%p1750_p5) target bundleno = 423 (0x1a7), region = 28  ;;  %s951_s25 = sshll.u32 (!%p1750_p5), %s1598_s3, 6 }
  0x5c   : > { %s167_s14 = scalar_lea.sflag (!%p1750_p5), [#allocation3], %s1598_s3  ;;  %s1602_s27 = scalar_lea.vmem (!%p1750_p5), [#allocation2], %s951_s25 }
  0x62   : > { %1360 = dma.done.wait (%p1751_p9), %s167_s14, 1024  }
  0x63   : > { %1362 = vsyncadd (%p1751_p9), %s167_s14, 4294966272  ;;  %p1752_p0 = scmp.ne.s32.totalorder %s1737_s19, 0 }
  0x65   : > { %1364 = dma.done.wait (%p1752_p0), [#allocation6], 3072  }
  0x66   : > { %1366 = vsyncadd (%p1752_p0), [#allocation6], 4294964224  ;;  %v1409_v0 = vmov 0   ;;  %v1201_v1 = vld [vmem:[#allocation5 + $0x4] ss:$12 sps:$4 sm:$0xff]   ;;  %v1229_v26 = vld [vmem:[%s1602_s27 + $0x8] sm:$0xff]  }
  0x67   : > { %454 = vmatprep.mubr.bf16.mxu0 %v1409_v0  ;;  %v1203_v2 = vld [vmem:[#allocation5] ss:$12 sps:$4 sm:$0xff]   ;;  %422 = vmatprep.subr.bf16.mxu0 %v1201_v1  ;;  %v1204_v3 = vld [vmem:[#allocation5 + $0x1c] ss:$12 sps:$4 sm:$0xff]   ;;  %v1206_v4 = vld [vmem:[#allocation5 + $0x18] ss:$12 sps:$4 sm:$0xff]  }
  0x68   : > { %423 = vmatpush1.bf16.msra.mxu0 %v1203_v2  ;;  %v1207_v5 = vld [vmem:[#allocation5 + $0x34] ss:$12 sps:$4 sm:$0xff]   ;;  %v1209_v6 = vld [vmem:[#allocation5 + $0x30] ss:$12 sps:$4 sm:$0xff]   ;;  %v1210_v7 = vld [vmem:[#allocation5 + $0x4c] ss:$12 sps:$4 sm:$0xff]  }
  0x69   : > { %424 = vmatprep.subr.bf16.mxu0 %v1204_v3  ;;  %v1212_v8 = vld [vmem:[#allocation5 + $0x48] ss:$12 sps:$4 sm:$0xff]   ;;  %v1213_v9 = vld [vmem:[#allocation5 + $0x64] ss:$12 sps:$4 sm:$0xff]   ;;  %v1227_v12 = vld [vmem:[#allocation5 + $0x20] ss:$12 sps:$4 sm:$0xff]  }
  0x6a   : > { %v1225_v10 = vld [vmem:[#allocation5 + $0x8] ss:$12 sps:$4 sm:$0xff]   ;;  %v1226_v11 = vld [vmem:[%s1602_s27] sm:$0xff]   ;;  %v1230_v17 = vld [vmem:[#allocation5 + $0x50] ss:$12 sps:$4 sm:$0xff]   ;;  %s1102_s19 = smul.u32 192, %s1598_s3 }
  0x6b   : > { %1070 = vmatprep.subr.bf16.mxu1 %v1225_v10  ;;  %v1215_v13 = vld [vmem:[#allocation5 + $0x60] ss:$12 sps:$4 sm:$0xff]   ;;  %1086 = vmatprep.mubr.bf16.mxu1 %v1226_v11  ;;  %v1228_v14 = vld [vmem:[#allocation5 + $0x38] ss:$12 sps:$4 sm:$0xff]   ;;  %v1216_v15 = vld [vmem:[#allocation5 + $0x7c] ss:$12 sps:$4 sm:$0xff]  }
  0x6c   : > { %425 = vmatpush1.bf16.msra.mxu0 %v1206_v4  ;;  %1071 = vmatpush3.bf16.msra.mxu1 %v1225_v10  ;;  %v1218_v16 = vld [vmem:[#allocation5 + $0x78] ss:$12 sps:$4 sm:$0xff]   ;;  %v1219_v18 = vld [vmem:[#allocation5 + $0x94] ss:$12 sps:$4 sm:$0xff]   ;;  %v1221_v19 = vld [vmem:[#allocation5 + $0x90] ss:$12 sps:$4 sm:$0xff]  }
  0x6d   : > { %426 = vmatprep.subr.bf16.mxu0 %v1207_v5  ;;  %1072 = vmatprep.subr.bf16.mxu1 %v1227_v12  ;;  %v1231_v20 = vld [vmem:[#allocation5 + $0x68] ss:$12 sps:$4 sm:$0xff]   ;;  %v1222_v21 = vld [vmem:[#allocation5 + $0xac] ss:$12 sps:$4 sm:$0xff]   ;;  %v1236_v25 = vld [vmem:[#allocation5 + $0xb0] ss:$12 sps:$4 sm:$0xff]  }
  0x6e   : > { %v1224_v22 = vld [vmem:[#allocation5 + $0xa8] ss:$12 sps:$4 sm:$0xff]   ;;  %v1233_v23 = vld [vmem:[#allocation5 + $0x80] ss:$12 sps:$4 sm:$0xff]   ;;  %v1234_v24 = vld [vmem:[#allocation5 + $0x98] ss:$12 sps:$4 sm:$0xff]  }
  0x6f   : > { %v1232_v27 = vld [vmem:[%s1602_s27 + $0x10] sm:$0xff]   ;;  %v1235_v28 = vld [vmem:[%s1602_s27 + $0x18] sm:$0xff]   ;;  %v1237_v29 = vld [vmem:[%s1602_s27 + $0x20] sm:$0xff]   ;;  %s1629_s21 = scalar_lea.vmem [#allocation7], %s1102_s19  ;;  %s1103_s23 = smul.u32 48, %s1385_s12 }
  0x70   : > { %427 = vmatpush1.bf16.msra.mxu0 %v1209_v6  ;;  %1073 = vmatpush3.bf16.msra.mxu1 %v1227_v12  ;;  %v1238_v30 = vld [vmem:[%s1602_s27 + $0x28] sm:$0xff]   ;;  %v1239_v31 = vld [vmem:[%s1602_s27 + $0x30] sm:$0xff]   ;;  %v1240_v32 = vld [vmem:[%s1602_s27 + $0x38] sm:$0xff]   ;;  %s1104_s24 = smul.u32 192, %s1389_s13  ;;  %s841_s28 = sshll.u32 %s1629_s21, 4  ;;  %s1669_s28 = int_to_ptr.vmem [resolvable:$true] %s841_s28 }
  0x71   : > { %428 = vmatprep.subr.bf16.mxu0 %v1210_v7  ;;  %1074 = vmatprep.subr.bf16.mxu1 %v1228_v14  ;;  %s825_s4 = scalar_lea.sflag [#allocation4], %s1598_s3  ;;  %s1299_s30 = scalar_lea.vmem %s1669_s28, 3072 }
  0x72   : > { %s838_s8 = sadd.s32 %s1104_s24, %s1103_s23  ;;  %p1300_p6 = scmp.ne.s32.totalorder %s1669_s28, %s1299_s30 }
  0x73   : > { %s1019_s29 = sshll.u32 %s838_s8, 6  ;;  %s1410_s5 = smov [#allocation7]  }
  0x74   : > { %429 = vmatpush1.bf16.msra.mxu0 %v1212_v8  ;;  %1075 = vmatpush3.bf16.msra.mxu1 %v1228_v14  ;;  %s1667_s1 = scalar_lea.hbm %s1727_s2, %s1019_s29  ;;  %p1301_p8 = pnand %p1300_p6, %p1533_p11 }
  0x75   : > { %430 = vmatprep.subr.bf16.mxu0 %v1213_v9  ;;  %1076 = vmatprep.subr.bf16.mxu1 %v1230_v17  ;;  %s1303_s6 = sshll.u32 %s1410_s5, 4  ;;  %s1304_s6 = int_to_ptr.vmem [resolvable:$false] %s1303_s6 }
  0x76   : > { %p1302_p10 = pneg %p1301_p8  ;;  %s1305_s20 = scalar_lea.vmem %s1304_s6, 6144 }
  0x77   : > { %p1306_p12 = scmp.lt.s32.totalorder %s1669_s28, %s1304_s6  ;;  %p1307_p13 = scmp.lt.s32.totalorder %s1305_s20, %s1299_s30 }
  0x78   : > { %431 = vmatpush1.bf16.msra.mxu0 %v1215_v13  ;;  %1077 = vmatpush3.bf16.msra.mxu1 %v1230_v17 }
  0x79   : > { %432 = vmatprep.subr.bf16.mxu0 %v1216_v15  ;;  %1078 = vmatprep.subr.bf16.mxu1 %v1231_v20  ;;  %p1308_p3 = por %p1307_p13, %p1306_p12 }
  0x7b   : > { %p1309_p7 = pnand %p1308_p3, %p1302_p10 }
  0x7c   : > { %433 = vmatpush1.bf16.msra.mxu0 %v1218_v16  ;;  %1079 = vmatpush3.bf16.msra.mxu1 %v1231_v20 }
  0x7d   : > { %434 = vmatprep.subr.bf16.mxu0 %v1219_v18  ;;  %1080 = vmatprep.subr.bf16.mxu1 %v1233_v23 }
  0x80   : > { %435 = vmatpush1.bf16.msra.mxu0 %v1221_v19  ;;  %1081 = vmatpush3.bf16.msra.mxu1 %v1233_v23 }
  0x81   : > { %436 = vmatprep.subr.bf16.mxu0 %v1222_v21  ;;  %1082 = vmatprep.subr.bf16.mxu1 %v1234_v24 }
  0x84   : > { %437 = vmatpush1.bf16.msra.mxu0 %v1224_v22  ;;  %1083 = vmatpush3.bf16.msra.mxu1 %v1234_v24 }
  0x85   : > { %1084 = vmatprep.subr.bf16.mxu1 %v1236_v25 }
  0x87   : > { %455 = vmatmul.mubr.bf16.vlgmr.msra.gmra.mrb[0].mxu0 %v1226_v11 }
  0x88   : > { %464 = vmatprep.mubr.bf16.mxu0 %v1409_v0  ;;  %1085 = vmatpush3.bf16.msra.mxu1 %v1236_v25 }
  0x8b   : > { %1087 = vmatmul.mubr.bf16.vlgmr.msra.gmra.mrb[0].mxu1 %v1229_v26 }
  0x8c   : > { %1090 = vmatprep.mubr.bf16.mxu1 %v1232_v27 }
  0x8f   : > { %465 = vmatmul.mubr.bf16.gmra.mrb[4].mxu0 %v1229_v26 }
  0x90   : > { %474 = vmatprep.mubr.bf16.mxu0 %v1409_v0 }
  0x93   : > { %1091 = vmatmul.mubr.bf16.gmra.mrb[4].mxu1 %v1235_v28 }
  0x94   : > { %1094 = vmatprep.mubr.bf16.mxu1 %v1237_v29 }
  0x97   : > { %475 = vmatmul.mubr.bf16.gmra.mrb[8].mxu0 %v1232_v27 }
  0x98   : > { %484 = vmatprep.mubr.bf16.mxu0 %v1409_v0 }
  0x9b   : > { %1095 = vmatmul.mubr.bf16.gmra.mrb[8].mxu1 %v1238_v30 }
  0x9c   : > { %1098 = vmatprep.mubr.bf16.mxu1 %v1239_v31 }
  0x9f   : > { %485 = vmatmul.mubr.bf16.gmra.mrb[12].mxu0 %v1235_v28 }
  0xa0   : > { %494 = vmatprep.mubr.bf16.mxu0 %v1409_v0 }
  0xa3   : > { %1099 = vmatmul.mubr.bf16.gmra.mrb[12].mxu1 %v1240_v32 }
  0xa7   : > { %495 = vmatmul.mubr.bf16.gmra.mrb[16].mxu0 %v1237_v29 }
  0xa8   : > { %504 = vmatprep.mubr.bf16.mxu0 %v1409_v0 }
  0xaf   : > { %505 = vmatmul.mubr.bf16.gmra.mrb[20].mxu0 %v1238_v30 }
  0xb0   : > { %514 = vmatprep.mubr.bf16.mxu0 %v1409_v0 }
  0xb7   : > { %515 = vmatmul.mubr.bf16.gmra.mrb[24].mxu0 %v1239_v31 }
  0xb8   : > { %524 = vmatprep.mubr.bf16.mxu0 %v1409_v0 }
  0xbf   : > { %525 = vmatmul.mubr.bf16.gmra.mrb[28].mxu0 %v1240_v32 }
 0x15a   : > { %v456_v33 = vpop.f32.mrb[0].mxu0 }
 0x15b   : > { %v458_v34 = vpop.f32.mrb[1].mxu0 }
 0x15c   : > { %v1022_v35 = vpack.c.bf16 %v458_v34, %v456_v33  ;;  %v460_v36 = vpop.f32.mrb[2].mxu0 }
 0x15d   : > { %v462_v37 = vpop.f32.mrb[3].mxu0 }
 0x15e   : > { %792 = vst [vmem:[%s1629_s21] sm:$0xff] %v1022_v35  ;;  %v1024_v38 = vpack.c.bf16 %v462_v37, %v460_v36  ;;  %v1088_v44 = vpop.f32.mrb[0].mxu1 }
 0x15f   : > { %v1027_v46 = vpack.c.bf16 %v1088_v44, %v1088_v44  ;;  %v569_v47 = vpop.f32.mrb[1].mxu1 }
 0x160   : > { %794 = vst [vmem:[%s1629_s21 + $0xc] sm:$0xff] %v1024_v38  ;;  %v1023_v48 = vpack.c.bf16 %v569_v47, %v569_v47  ;;  %v1089_v49 = vpop.f32.mrb[2].mxu1 }
 0x161   : > { %797 = vst [vmem:[%s1629_s21 + $0x20] sm:$0xf] %v1027_v46  ;;  %v1029_v50 = vpack.c.bf16 %v1089_v49, %v1089_v49  ;;  %v572_v51 = vpop.f32.mrb[3].mxu1 }
 0x162   : > { %v466_v39 = vpop.f32.mrb[4].mxu0  ;;  %793 = vst [vmem:[%s1629_s21 + $0x8] sm:$0xf] %v1023_v48  ;;  %v1025_v52 = vpack.c.bf16 %v572_v51, %v572_v51 }
 0x163   : > { %v468_v40 = vpop.f32.mrb[5].mxu0  ;;  %799 = vst [vmem:[%s1629_s21 + $0x2c] sm:$0xf] %v1029_v50 }
 0x164   : > { %v1026_v41 = vpack.c.bf16 %v468_v40, %v466_v39  ;;  %v470_v42 = vpop.f32.mrb[6].mxu0  ;;  %795 = vst [vmem:[%s1629_s21 + $0x14] sm:$0xf] %v1025_v52 }
 0x165   : > { %v472_v43 = vpop.f32.mrb[7].mxu0 }
 0x166   : > { %796 = vst [vmem:[%s1629_s21 + $0x18] sm:$0xff] %v1026_v41  ;;  %v1028_v45 = vpack.c.bf16 %v472_v43, %v470_v42  ;;  %v1092_v58 = vpop.f32.mrb[4].mxu1 }
 0x167   : > { %v1035_v60 = vpack.c.bf16 %v1092_v58, %v1092_v58  ;;  %v585_v61 = vpop.f32.mrb[5].mxu1 }
 0x168   : > { %798 = vst [vmem:[%s1629_s21 + $0x24] sm:$0xff] %v1028_v45  ;;  %v1031_v62 = vpack.c.bf16 %v585_v61, %v585_v61  ;;  %v1093_v63 = vpop.f32.mrb[6].mxu1 }
 0x169   : > { %805 = vst [vmem:[%s1629_s21 + $0x50] sm:$0xf] %v1035_v60  ;;  %v1037_v0 = vpack.c.bf16 %v1093_v63, %v1093_v63  ;;  %v588_v1 = vpop.f32.mrb[7].mxu1 }
 0x16a   : > { %v476_v53 = vpop.f32.mrb[8].mxu0  ;;  %801 = vst [vmem:[%s1629_s21 + $0x38] sm:$0xf] %v1031_v62  ;;  %v1033_v2 = vpack.c.bf16 %v588_v1, %v588_v1 }
 0x16b   : > { %v478_v54 = vpop.f32.mrb[9].mxu0  ;;  %807 = vst [vmem:[%s1629_s21 + $0x5c] sm:$0xf] %v1037_v0 }
 0x16c   : > { %v1030_v55 = vpack.c.bf16 %v478_v54, %v476_v53  ;;  %v480_v56 = vpop.f32.mrb[10].mxu0  ;;  %803 = vst [vmem:[%s1629_s21 + $0x44] sm:$0xf] %v1033_v2 }
 0x16d   : > { %v482_v57 = vpop.f32.mrb[11].mxu0 }
 0x16e   : > { %800 = vst [vmem:[%s1629_s21 + $0x30] sm:$0xff] %v1030_v55  ;;  %v1032_v59 = vpack.c.bf16 %v482_v57, %v480_v56  ;;  %v1096_v8 = vpop.f32.mrb[8].mxu1 }
 0x16f   : > { %v1043_v10 = vpack.c.bf16 %v1096_v8, %v1096_v8  ;;  %v601_v11 = vpop.f32.mrb[9].mxu1 }
 0x170   : > { %802 = vst [vmem:[%s1629_s21 + $0x3c] sm:$0xff] %v1032_v59  ;;  %v1039_v12 = vpack.c.bf16 %v601_v11, %v601_v11  ;;  %v1097_v13 = vpop.f32.mrb[10].mxu1 }
 0x171   : > { %813 = vst [vmem:[%s1629_s21 + $0x80] sm:$0xf] %v1043_v10  ;;  %v1045_v14 = vpack.c.bf16 %v1097_v13, %v1097_v13  ;;  %v604_v15 = vpop.f32.mrb[11].mxu1 }
 0x172   : > { %v486_v3 = vpop.f32.mrb[12].mxu0  ;;  %809 = vst [vmem:[%s1629_s21 + $0x68] sm:$0xf] %v1039_v12  ;;  %v1041_v16 = vpack.c.bf16 %v604_v15, %v604_v15 }
 0x173   : > { %v488_v4 = vpop.f32.mrb[13].mxu0  ;;  %815 = vst [vmem:[%s1629_s21 + $0x8c] sm:$0xf] %v1045_v14 }
 0x174   : > { %v1034_v5 = vpack.c.bf16 %v488_v4, %v486_v3  ;;  %v490_v6 = vpop.f32.mrb[14].mxu0  ;;  %811 = vst [vmem:[%s1629_s21 + $0x74] sm:$0xf] %v1041_v16 }
 0x175   : > { %v492_v7 = vpop.f32.mrb[15].mxu0 }
 0x176   : > { %804 = vst [vmem:[%s1629_s21 + $0x48] sm:$0xff] %v1034_v5  ;;  %v1036_v9 = vpack.c.bf16 %v492_v7, %v490_v6  ;;  %v1100_v22 = vpop.f32.mrb[12].mxu1 }
 0x177   : > { %v1051_v24 = vpack.c.bf16 %v1100_v22, %v1100_v22  ;;  %v617_v25 = vpop.f32.mrb[13].mxu1 }
 0x178   : > { %806 = vst [vmem:[%s1629_s21 + $0x54] sm:$0xff] %v1036_v9  ;;  %v1047_v26 = vpack.c.bf16 %v617_v25, %v617_v25  ;;  %v1101_v27 = vpop.f32.mrb[14].mxu1 }
 0x179   : > { %821 = vst [vmem:[%s1629_s21 + $0xb0] sm:$0xf] %v1051_v24  ;;  %v1053_v28 = vpack.c.bf16 %v1101_v27, %v1101_v27  ;;  %v620_v29 = vpop.f32.mrb[15].mxu1 }
 0x17a   : > { %v496_v17 = vpop.f32.mrb[16].mxu0  ;;  %817 = vst [vmem:[%s1629_s21 + $0x98] sm:$0xf] %v1047_v26  ;;  %v1049_v30 = vpack.c.bf16 %v620_v29, %v620_v29 }
 0x17b   : > { %v498_v18 = vpop.f32.mrb[17].mxu0  ;;  %823 = vst [vmem:[%s1629_s21 + $0xbc] sm:$0xf] %v1053_v28 }
 0x17c   : > { %v1038_v19 = vpack.c.bf16 %v498_v18, %v496_v17  ;;  %v500_v20 = vpop.f32.mrb[18].mxu0  ;;  %819 = vst [vmem:[%s1629_s21 + $0xa4] sm:$0xf] %v1049_v30 }
 0x17d   : > { %v502_v21 = vpop.f32.mrb[19].mxu0 }
 0x17e   : > { %808 = vst [vmem:[%s1629_s21 + $0x60] sm:$0xff] %v1038_v19  ;;  %v1040_v23 = vpack.c.bf16 %v502_v21, %v500_v20 }
 0x180   : > { %810 = vst [vmem:[%s1629_s21 + $0x6c] sm:$0xff] %v1040_v23 }
 0x182   : > { %v506_v31 = vpop.f32.mrb[20].mxu0 }
 0x183   : > { %v508_v32 = vpop.f32.mrb[21].mxu0 }
 0x184   : > { %v1042_v33 = vpack.c.bf16 %v508_v32, %v506_v31  ;;  %v510_v34 = vpop.f32.mrb[22].mxu0 }
 0x185   : > { %v512_v35 = vpop.f32.mrb[23].mxu0 }
 0x186   : > { %812 = vst [vmem:[%s1629_s21 + $0x78] sm:$0xff] %v1042_v33  ;;  %v1044_v36 = vpack.c.bf16 %v512_v35, %v510_v34 }
 0x188   : > { %814 = vst [vmem:[%s1629_s21 + $0x84] sm:$0xff] %v1044_v36 }
 0x18a   : > { %v516_v37 = vpop.f32.mrb[24].mxu0 }
 0x18b   : > { %v518_v38 = vpop.f32.mrb[25].mxu0 }
 0x18c   : > { %v1046_v39 = vpack.c.bf16 %v518_v38, %v516_v37  ;;  %v520_v40 = vpop.f32.mrb[26].mxu0 }
 0x18d   : > { %v522_v41 = vpop.f32.mrb[27].mxu0 }
 0x18e   : > { %816 = vst [vmem:[%s1629_s21 + $0x90] sm:$0xff] %v1046_v39  ;;  %v1048_v42 = vpack.c.bf16 %v522_v41, %v520_v40 }
 0x190   : > { %818 = vst [vmem:[%s1629_s21 + $0x9c] sm:$0xff] %v1048_v42 }
 0x192   : > { %v526_v43 = vpop.f32.mrb[28].mxu0 }
 0x193   : > { %v528_v44 = vpop.f32.mrb[29].mxu0 }
 0x194   : > { %v1050_v45 = vpack.c.bf16 %v528_v44, %v526_v43  ;;  %v530_v46 = vpop.f32.mrb[30].mxu0 }
 0x195   : > { %v532_v47 = vpop.f32.mrb[31].mxu0 }
 0x196   : > { %820 = vst [vmem:[%s1629_s21 + $0xa8] sm:$0xff] %v1050_v45  ;;  %v1052_v48 = vpack.c.bf16 %v532_v47, %v530_v46 }
 0x198   : > { %822 = vst [vmem:[%s1629_s21 + $0xb4] sm:$0xff] %v1052_v48 }
 0x199   : > { %1312 = shalt.err (!%p1309_p7)
}
 0x19a   : > { %s1313_s7 = scalar_lea.hbm %s1667_s1, 3072  ;;  %s1317_s14 = scalar_lea.hbm %s1727_s2, 24576 }
 0x19b   : > { %p1314_p1 = scmp.ne.s32.totalorder %s1667_s1, %s1313_s7  ;;  %p1318_p5 = scmp.lt.u32.totalorder %s1667_s1, %s1727_s2 }
 0x19c   : > { %p1319_p9 = scmp.lt.u32.totalorder %s1317_s14, %s1313_s7  ;;  %p1321_p6 = scmp.lt.u32.totalorder %s1313_s7, %s1667_s1 }
 0x19d   : > { %p1315_p2 = pnand %p1314_p1, %p1533_p11 }
 0x19e   : > { %p1320_p0 = por %p1319_p9, %p1318_p5 }
 0x19f   : > { %p1316_p4 = pneg %p1315_p2 }
 0x1a0   : > { %p1322_p8 = por %p1321_p6, %p1320_p0 }
 0x1a2   : > { %p1323_p10 = pnand %p1322_p8, %p1316_p4 }
 0x1a4   : > { %1326 = shalt.err (!%p1323_p10)
}
 0x1a5   : > { %s1411_s21 = smov 192   ;;  %s1412_s23 = smov 12  }
 0x1a6   : > { %1111 = dma.vmem_to_hbm [thread:$0]  (%p1533_p11), %s1669_s28, 3072, %s1667_s1, %s825_s4, %s1411_s21, %s1411_s21, %s1412_s23  }
 0x1a7 PF: > { %p1128_p12 = scmp.ge.s32.totalorder %s1401_s16, 2  ;;  %s856_s24 = sand.u32 1, %s1373_s9  }
 0x1a8   : > { %p1753_p13 = scmp.ne.s32.totalorder %s1740_s22, 0  ;;  %s857_s8 = scalar_lea.sflag [#allocation4], %s856_s24 }
 0x1aa   : > { %p1122_p3 = pnand %p1128_p12, %p1753_p13 }
 0x1ac   : > { %1368 = dma.done.wait (!%p1122_p3), %s857_s8, 3072  }
 0x1ad   : > { %1370 = vsyncadd (!%p1122_p3), %s857_s8, 4294964224  ;;  %s19_s16 = sadd.s32 1, %s1401_s16   ;;  %s1754_s12 = sld [smem:[#allocation11_spill]] }
 0x1ae   : > { %p16_p7 = scmp.ge.s32.totalorder %s19_s16, 10   ;;  %s1755_s14 = sld [smem:[#allocation12_spill]] }
 0x1af   : > { %s1756_s26 = sld [smem:[#allocation13_spill]]  ;;  %s1757_s9 = smov %s1377_s10 }
 0x1b0   : > { %s1758_s10 = smov %s1381_s11  ;;  %s1759_s11 = smov %s1550_s17 }
 0x1b1   : > { %s1760_s13 = smov %s1397_s15  ;;  %18 = sbr.rel (!%p16_p7) target bundleno = 10 (0xa), region = 77 }
 0x1b5   : > { %s1761_s15 = smov %s1756_s26 }
 0x1b8   :  { %862 = vsyncpa [#allocation3], 1 }
 0x1b9   :  { %864 = vsyncpa [#allocation3 + $0x1], 1 }
 0x1ba   :  { %865 = vsyncpa [#allocation6], 1 }
 0x1bb   :  { %866 = vsyncpa [#allocation4], 1 }
 0x1bc   :  { %868 = vsyncpa [#allocation4 + $0x1], 1 }

</bundles_post_ra>
